<compile_context>
chip_gen: v5e
topology: v5e:2x2
jax: 0.10.0
libtpu: 0.0.40
codegen_flags: <defaults>
</compile_context>

<pallas_src>
import jax
import jax.numpy as jnp
from jax.experimental import pallas as pl
from jax.experimental.pallas import tpu as pltpu


def _round_up(x, m):
    return ((x + m - 1) // m) * m


# --------------------------------------------------------------------------
# Kernel: one batch tile.
#   X:(TB,Dp) bf16, W1:(Dp,Hp) bf16, b1:(1,Hp) f32,
#   W2:(Hp,NCp) bf16, bf:(1,NCp) f32  ->  out:(TB,NCp) f32
# --------------------------------------------------------------------------
def ensemble_kernel(x_ref, w1_ref, b1_ref, w2_ref, bf_ref, out_ref):
    # Fused block-diagonal first layer of both branches: H = relu(X @ W1 + b1)
    h = jnp.dot(x_ref[...], w1_ref[...], preferred_element_type=jnp.float32)
    h = jnp.maximum(h + b1_ref[...], 0.0)
    # Fused (second layers + meta classifier): logits = H @ W2_fused + b_fused
    out_ref[...] = (
        jnp.dot(h.astype(w2_ref.dtype), w2_ref[...],
                preferred_element_type=jnp.float32)
        + bf_ref[...]
    )


# --------------------------------------------------------------------------
# Wrapper: weight folding, lane/sublane padding, batch-tiled pallas_call.
# --------------------------------------------------------------------------
def ensemble_forward(seq_input, nonseq_input, params, *, tb=512):
    B = seq_input.shape[0]
    n_classes = params["bm"].shape[-1]
    din_s, hidden_s = params["w1s"].shape
    din_n, hidden_n = params["w1n"].shape
    din = din_s + din_n
    h2 = hidden_s + hidden_n

    # ---- fold weights (f32, once per call) --------------------------------
    # block-diagonal first layer: [seq|ns] @ blkdiag(w1s, w1n) = [h_s|h_n]
    w1_blk = jnp.zeros((din, h2), jnp.float32)
    w1_blk = w1_blk.at[:din_s, :hidden_s].set(params["w1s"])
    w1_blk = w1_blk.at[din_s:, hidden_s:].set(params["w1n"])
    b1 = jnp.concatenate([params["b1s"], params["b1n"]], axis=-1)            # (1,2H)
    # fold second layers + meta: logits = h_s@(w2s@wm_s) + h_n@(w2n@wm_n) + b_f
    w2_fused = jnp.concatenate([params["w2s"] @ params["wm_s"],
                                params["w2n"] @ params["wm_n"]], axis=0)      # (2H,C)
    b_fused = (params["b2s"] @ params["wm_s"]
               + params["b2n"] @ params["wm_n"] + params["bm"])               # (1,C)

    # ---- lane-dense padding of all minor dims ------------------------------
    dinp = _round_up(max(din, 128), 128)
    h2p = _round_up(max(h2, 128), 128)
    ncp = _round_up(max(n_classes, 128), 128)
    if dinp != din or h2p != h2:
        w1_blk = jnp.pad(w1_blk, ((0, dinp - din), (0, h2p - h2)))
        b1 = jnp.pad(b1, ((0, 0), (0, h2p - h2)))
    if h2p != h2 or ncp != n_classes:
        w2_fused = jnp.pad(w2_fused, ((0, h2p - h2), (0, ncp - n_classes)))
    if ncp != n_classes:
        b_fused = jnp.pad(b_fused, ((0, 0), (0, ncp - n_classes)))

    # ---- batch tiling -------------------------------------------------------
    x = jnp.concatenate([seq_input, nonseq_input], axis=-1)                   # (B,Din)
    if dinp != din:
        x = jnp.pad(x, ((0, 0), (0, dinp - din)))
    TB = min(tb, _round_up(B, 8))
    Bp = _round_up(B, TB)
    if Bp != B:
        x = jnp.pad(x, ((0, Bp - B), (0, 0)))

    # bf16 matmul operands, f32 biases / accumulation
    x_bf = x.astype(jnp.bfloat16)
    w1_bf = w1_blk.astype(jnp.bfloat16)
    w2_bf = w2_fused.astype(jnp.bfloat16)

    grid = (Bp // TB,)

    out = pl.pallas_call(
        ensemble_kernel,
        out_shape=jax.ShapeDtypeStruct((Bp, ncp), jnp.float32),
        grid_spec=pltpu.PrefetchScalarGridSpec(
            num_scalar_prefetch=0,
            grid=grid,
            in_specs=[
                pl.BlockSpec((TB, dinp), lambda i: (i, 0)),   # batch-tiled input
                pl.BlockSpec((dinp, h2p), lambda i: (0, 0)),  # resident W1 (blkdiag)
                pl.BlockSpec((1, h2p), lambda i: (0, 0)),     # resident b1
                pl.BlockSpec((h2p, ncp), lambda i: (0, 0)),   # resident W2_fused
                pl.BlockSpec((1, ncp), lambda i: (0, 0)),     # resident b_fused
            ],
            out_specs=pl.BlockSpec((TB, ncp), lambda i: (i, 0)),
        ),
        compiler_params=pltpu.CompilerParams(
            dimension_semantics=("parallel",)),
    )(x_bf, w1_bf, b1, w2_bf, b_fused)

    return out[:B, :n_classes]


def model_forward(input_data, params, *, tb=512):
    """Mirrors Model.forward: cat seq / nonseq features, branches + meta."""
    seq_features = ['api_calls', 'file_system', 'registry', 'opcodes']
    nonseq_features = ['strings', 'import_table']
    seq_input = jnp.concatenate([input_data[f] for f in seq_features], axis=-1)
    nonseq_input = jnp.concatenate([input_data[f] for f in nonseq_features], axis=-1)
    return ensemble_forward(seq_input, nonseq_input, params, tb=tb)


def init_params(key, seq_in_dim, nonseq_in_dim, hidden, branch_out, n_classes):
    ks = jax.random.split(key, 7)
    scale = 0.05
    return {
        "w1s": scale * jax.random.normal(ks[0], (seq_in_dim, hidden), jnp.float32),
        "b1s": jnp.zeros((1, hidden), jnp.float32),
        "w2s": scale * jax.random.normal(ks[1], (hidden, branch_out), jnp.float32),
        "b2s": jnp.zeros((1, branch_out), jnp.float32),
        "w1n": scale * jax.random.normal(ks[2], (nonseq_in_dim, hidden), jnp.float32),
        "b1n": jnp.zeros((1, hidden), jnp.float32),
        "w2n": scale * jax.random.normal(ks[3], (hidden, branch_out), jnp.float32),
        "b2n": jnp.zeros((1, branch_out), jnp.float32),
        # meta weight split: top half multiplies seq_out, bottom half nonseq_out
        "wm_s": scale * jax.random.normal(ks[4], (branch_out, n_classes), jnp.float32),
        "wm_n": scale * jax.random.normal(ks[5], (branch_out, n_classes), jnp.float32),
        "bm": jnp.zeros((1, n_classes), jnp.float32),
    }


def reference_forward(input_data, params):
    """Plain-JAX f32 reference replicating the PyTorch semantics (unfused)."""
    seq_features = ['api_calls', 'file_system', 'registry', 'opcodes']
    nonseq_features = ['strings', 'import_table']
    seq_in = jnp.concatenate([input_data[f] for f in seq_features], axis=-1)
    ns_in = jnp.concatenate([input_data[f] for f in nonseq_features], axis=-1)
    h_s = jnp.maximum(seq_in @ params["w1s"] + params["b1s"], 0.0)
    o_s = h_s @ params["w2s"] + params["b2s"]
    h_n = jnp.maximum(ns_in @ params["w1n"] + params["b1n"], 0.0)
    o_n = h_n @ params["w2n"] + params["b2n"]
    combined = jnp.concatenate((o_s, o_n), axis=1)
    wm = jnp.concatenate((params["wm_s"], params["wm_n"]), axis=0)
    return combined @ wm + params["bm"]


if __name__ == "__main__":
    # Small, deterministic shapes.
    seq_feat_dim = 32       # per sequential feature -> 4 * 32 = 128 after cat
    nonseq_feat_dim = 64    # per non-sequential feature -> 2 * 64 = 128 after cat
    hidden = 64
    branch_out = 32
    n_classes = 2

    key = jax.random.PRNGKey(0)
    k_in, k_par = jax.random.split(key)
    params = init_params(k_par,
                         seq_in_dim=4 * seq_feat_dim,
                         nonseq_in_dim=2 * nonseq_feat_dim,
                         hidden=hidden,
                         branch_out=branch_out,
                         n_classes=n_classes)

    def make_inputs(k, B):
        kf = jax.random.split(k, 6)
        return {
            'api_calls':    jax.random.normal(kf[0], (B, seq_feat_dim), jnp.float32),
            'file_system':  jax.random.normal(kf[1], (B, seq_feat_dim), jnp.float32),
            'registry':     jax.random.normal(kf[2], (B, seq_feat_dim), jnp.float32),
            'opcodes':      jax.random.normal(kf[3], (B, seq_feat_dim), jnp.float32),
            'strings':      jax.random.normal(kf[4], (B, nonseq_feat_dim), jnp.float32),
            'import_table': jax.random.normal(kf[5], (B, nonseq_feat_dim), jnp.float32),
        }

    # Check 1: small batch, single grid step.
    B1 = 8
    in1 = make_inputs(jax.random.fold_in(k_in, 1), B1)
    out1 = jax.block_until_ready(model_forward(in1, params))
    ref1 = reference_forward(in1, params)
    assert out1.shape == (B1, n_classes)
    # bf16 operands => loose tolerance vs the f32 reference.
    assert jnp.allclose(out1, ref1, atol=2e-2, rtol=2e-2), "mismatch vs reference (B=8)"

    # Check 2: multi-tile grid with batch padding (B=20 not a multiple of TB=16).
    B2 = 20
    in2 = make_inputs(jax.random.fold_in(k_in, 2), B2)
    out2 = jax.block_until_ready(model_forward(in2, params, tb=16))
    ref2 = reference_forward(in2, params)
    assert out2.shape == (B2, n_classes)
    assert jnp.allclose(out2, ref2, atol=2e-2, rtol=2e-2), "mismatch vs reference (B=20)"

    print("KERNEL_OK")
</pallas_src>

<mosaic_0001>
module attributes {stable_mosaic.version = 11 : i64} {
  func.func @ensemble_kernel(%arg0: i32, %arg1: memref<8x256xbf16, #tpu.memory_space<vmem>>, %arg2: memref<256x128xbf16, #tpu.memory_space<vmem>>, %arg3: memref<1x128xf32, #tpu.memory_space<vmem>>, %arg4: memref<128x128xbf16, #tpu.memory_space<vmem>>, %arg5: memref<1x128xf32, #tpu.memory_space<vmem>>, %arg6: memref<8x128xf32, #tpu.memory_space<vmem>>) attributes {dimension_semantics = [#tpu.dimension_semantics<parallel>], iteration_bounds = array<i64: 1>, scalar_prefetch = 0 : i64, scratch_operands = 0 : i64, tpu.core_type = #tpu.core_type<tc>, window_params = [{transform_indices = @transform_0, window_bounds = array<i64: 8, 256>}, {pipeline_mode = #tpu.pipeline_mode<synchronous>, transform_indices = @transform_1, window_bounds = array<i64: 256, 128>}, {pipeline_mode = #tpu.pipeline_mode<synchronous>, transform_indices = @transform_2, window_bounds = array<i64: 1, 128>}, {pipeline_mode = #tpu.pipeline_mode<synchronous>, transform_indices = @transform_3, window_bounds = array<i64: 128, 128>}, {pipeline_mode = #tpu.pipeline_mode<synchronous>, transform_indices = @transform_4, window_bounds = array<i64: 1, 128>}, {transform_indices = @transform_5, window_bounds = array<i64: 8, 128>}]} {
    %c0 = arith.constant 0 : index
    %c0_0 = arith.constant 0 : index
    %0 = vector.load %arg1[%c0, %c0_0] : memref<8x256xbf16, #tpu.memory_space<vmem>>, vector<8x256xbf16>
    %c0_1 = arith.constant 0 : index
    %c0_2 = arith.constant 0 : index
    %1 = vector.load %arg2[%c0_1, %c0_2] : memref<256x128xbf16, #tpu.memory_space<vmem>>, vector<256x128xbf16>
    %cst = arith.constant dense<0.000000e+00> : vector<8x128xf32>
    %2 = tpu.matmul %0, %1, %cst {dimension_numbers = #tpu.dot_dimension_numbers<[1], [0], [0], [1], [0, 0, 1, 1], [], []>} : vector<8x256xbf16>, vector<256x128xbf16>, vector<8x128xf32> -> vector<8x128xf32>
    %c0_3 = arith.constant 0 : index
    %c0_4 = arith.constant 0 : index
    %3 = vector.load %arg3[%c0_3, %c0_4] : memref<1x128xf32, #tpu.memory_space<vmem>>, vector<1x128xf32>
    %4 = vector.broadcast %3 : vector<1x128xf32> to vector<8x128xf32>
    %5 = arith.addf %2, %4 : vector<8x128xf32>
    %cst_5 = arith.constant 0.000000e+00 : f32
    %6 = vector.broadcast %cst_5 : f32 to vector<8x128xf32>
    %7 = arith.maximumf %5, %6 : vector<8x128xf32>
    %8 = arith.truncf %7 : vector<8x128xf32> to vector<8x128xbf16>
    %c0_6 = arith.constant 0 : index
    %c0_7 = arith.constant 0 : index
    %9 = vector.load %arg4[%c0_6, %c0_7] : memref<128x128xbf16, #tpu.memory_space<vmem>>, vector<128x128xbf16>
    %cst_8 = arith.constant dense<0.000000e+00> : vector<8x128xf32>
    %10 = tpu.matmul %8, %9, %cst_8 {dimension_numbers = #tpu.dot_dimension_numbers<[1], [0], [0], [1], [0, 0, 1, 1], [], []>} : vector<8x128xbf16>, vector<128x128xbf16>, vector<8x128xf32> -> vector<8x128xf32>
    %c0_9 = arith.constant 0 : index
    %c0_10 = arith.constant 0 : index
    %11 = vector.load %arg5[%c0_9, %c0_10] : memref<1x128xf32, #tpu.memory_space<vmem>>, vector<1x128xf32>
    %12 = vector.broadcast %11 : vector<1x128xf32> to vector<8x128xf32>
    %13 = arith.addf %10, %12 : vector<8x128xf32>
    %c0_11 = arith.constant 0 : index
    %c0_12 = arith.constant 0 : index
    %14 = vector.load %arg6[%c0_11, %c0_12] : memref<8x128xf32, #tpu.memory_space<vmem>>, vector<8x128xf32>
    tpu.vector_store %arg6[%c0_11, %c0_12], %13 {strides = array<i32>} : memref<8x128xf32, #tpu.memory_space<vmem>>, vector<8x128xf32>,
    return
  }
  func.func @transform_0(%arg0: i32) -> (i32, i32) {
    %c0_i32 = arith.constant 0 : i32
    %c0_i32_0 = arith.constant 0 : i32
    return %arg0, %c0_i32 : i32, i32
  }
  func.func @transform_1(%arg0: i32) -> (i32, i32) {
    %c0_i32 = arith.constant 0 : i32
    %c0_i32_0 = arith.constant 0 : i32
    %c0_i32_1 = arith.constant 0 : i32
    return %c0_i32, %c0_i32_0 : i32, i32
  }
  func.func @transform_2(%arg0: i32) -> (i32, i32) {
    %c0_i32 = arith.constant 0 : i32
    %c0_i32_0 = arith.constant 0 : i32
    %c0_i32_1 = arith.constant 0 : i32
    return %c0_i32, %c0_i32_0 : i32, i32
  }
  func.func @transform_3(%arg0: i32) -> (i32, i32) {
    %c0_i32 = arith.constant 0 : i32
    %c0_i32_0 = arith.constant 0 : i32
    %c0_i32_1 = arith.constant 0 : i32
    return %c0_i32, %c0_i32_0 : i32, i32
  }
  func.func @transform_4(%arg0: i32) -> (i32, i32) {
    %c0_i32 = arith.constant 0 : i32
    %c0_i32_0 = arith.constant 0 : i32
    %c0_i32_1 = arith.constant 0 : i32
    return %c0_i32, %c0_i32_0 : i32, i32
  }
  func.func @transform_5(%arg0: i32) -> (i32, i32) {
    %c0_i32 = arith.constant 0 : i32
    %c0_i32_0 = arith.constant 0 : i32
    return %arg0, %c0_i32 : i32, i32
  }
}

</mosaic_0001>

<bundles_post_ra>
// kernel: tpu_custom_call.1
= control target key start
LH: loop header
LB: loop body
LE: loop exit
PB: predicated region body
PF: predicated region fallthrough
CT: control target
= control target key end

     0   :  { %10 = vsyncpa [#allocation3], 0  ;;  %s618_s0 = inlined_call_operand.hbm [shape: bf16[8,256], index: 0, kind: input, shape index: {}]   ;;  %s619_s1 = inlined_call_operand.hbm [shape: bf16[256,128], index: 1, kind: input, shape index: {}]   ;;  %s620_s2 = inlined_call_operand.vmem [shape: f32[1,128], index: 2, kind: input, shape index: {}]   ;;  %s621_s3 = inlined_call_operand.hbm [shape: bf16[128,128], index: 3, kind: input, shape index: {}]   ;;  %s622_s4 = inlined_call_operand.vmem [shape: f32[1,128], index: 4, kind: input, shape index: {}]   ;;  %s623_s5 = inlined_call_operand.hbm [shape: f32[8,128], index: 5, kind: output, shape index: {}]  }
   0x1   :  { %11 = vsyncpa [#allocation6], 0  ;;  %s28_s20 = sshll.u32 %s619_s1, 4  ;;  %s29_s20 = int_to_ptr.hbm [resolvable:$true] %s28_s20 }
   0x2   :  { %12 = vsyncpa [#allocation4], 0  ;;  %s564_s21 = smov [#allocation5]   ;;  %s18_s25 = sshll.u32 %s618_s0, 4  ;;  %s19_s25 = int_to_ptr.hbm [resolvable:$true] %s18_s25 }
   0x3   :  { %s30_s22 = sshll.u32 %s564_s21, 4  ;;  %s565_s26 = smov 64   ;;  %s31_s22 = int_to_ptr.vmem [resolvable:$true] %s30_s22 }
   0x4   :  { %s566_s27 = smov 4   ;;  %s567_s28 = smov [#allocation2]  }
   0x5   :  { %36 = dma.hbm_to_vmem [thread:$0]  %s29_s20, 2048, %s31_s22, [#allocation6], %s565_s26, %s565_s26, %s566_s27  }
   0x6   :  { %s20_s29 = sshll.u32 %s567_s28, 4  ;;  %s43_s7 = sshll.u32 %s621_s3, 4  ;;  %s21_s29 = int_to_ptr.vmem [resolvable:$true] %s20_s29  ;;  %s44_s7 = int_to_ptr.hbm [resolvable:$true] %s43_s7 }
   0x7   :  { %23 = dma.hbm_to_vmem [thread:$0]  %s19_s25, 128, %s21_s29, [#allocation3]  }
   0x8   :  { %s568_s1 = smov [#allocation7]  }
   0x9   :  { %s45_s8 = sshll.u32 %s568_s1, 4  ;;  %s46_s8 = int_to_ptr.vmem [resolvable:$true] %s45_s8 }
   0xa   :  { %51 = dma.hbm_to_vmem [thread:$0]  %s44_s7, 1024, %s46_s8, [#allocation6], %s565_s26, %s565_s26, %s566_s27  }
   0xb   :  { %558 = dma.done.wait [#allocation3], 128  }
   0xc   :  { %559 = vsyncadd [#allocation3], 4294967168 }
   0xd   :  { %560 = dma.done.wait [#allocation6], 3072  }
   0xe   :  { %561 = vsyncadd [#allocation6], 4294964224  ;;  %v437_v0 = vld [vmem:[#allocation5 + $0x38] sm:$0xff]  ;;  %v436_v2 = vld [vmem:[#allocation5 + $0x30] sm:$0xff]  ;;  %s569_s11 = smov [#allocation8]   ;;  %s323_s15 = sshll.u32 %s623_s5, 4  ;;  %s324_s15 = int_to_ptr.hbm [resolvable:$true] %s323_s15 }
   0xf   :  { %v445_v1 = vld [vmem:[#allocation5 + $0x78] sm:$0xff]  ;;  %206 = vmatpush.bf16.msra.mxu0 %v437_v0  ;;  %v444_v3 = vld [vmem:[#allocation5 + $0x70] sm:$0xff]  ;;  %v435_v5 = vld [vmem:[#allocation5 + $0x28] sm:$0xff]  ;;  %s321_s12 = sshll.u32 %s569_s11, 4  ;;  %s322_s12 = int_to_ptr.vmem [resolvable:$true] %s321_s12 }
  0x10   :  { %219 = vmatpush.bf16.msra.mxu1 %v445_v1  ;;  %v453_v4 = vld [vmem:[#allocation7 + $0x38] sm:$0xff]  ;;  %v443_v6 = vld [vmem:[#allocation5 + $0x68] sm:$0xff]  ;;  %v452_v7 = vld [vmem:[#allocation7 + $0x30] sm:$0xff] }
  0x11   :  { %302 = vmatpush.bf16.msra.mxu2 %v453_v4  ;;  %v434_v8 = vld [vmem:[#allocation5 + $0x20] sm:$0xff]  ;;  %v451_v10 = vld [vmem:[#allocation7 + $0x28] sm:$0xff]  ;;  %v433_v11 = vld [vmem:[#allocation5 + $0x18] sm:$0xff] }
  0x12   :  { %v442_v9 = vld [vmem:[#allocation5 + $0x60] sm:$0xff]  ;;  %v441_v12 = vld [vmem:[#allocation5 + $0x58] sm:$0xff]  ;;  %v432_v14 = vld [vmem:[#allocation5 + $0x10] sm:$0xff] }
  0x13   :  { %207 = vmatpush.bf16.msra.mxu0 %v436_v2  ;;  %v450_v13 = vld [vmem:[#allocation7 + $0x20] sm:$0xff]  ;;  %v440_v15 = vld [vmem:[#allocation5 + $0x50] sm:$0xff]  ;;  %v449_v16 = vld [vmem:[#allocation7 + $0x18] sm:$0xff] }
  0x14   :  { %220 = vmatpush.bf16.msra.mxu1 %v444_v3  ;;  %v431_v17 = vld [vmem:[#allocation5 + $0x8] sm:$0xff]  ;;  %v66_v19 = vld [vmem:[#allocation2] sm:$0xff]  ;;  %v448_v20 = vld [vmem:[#allocation7 + $0x10] sm:$0xff] }
  0x15   :  { %303 = vmatpush.bf16.msra.mxu2 %v452_v7  ;;  %v439_v18 = vld [vmem:[#allocation5 + $0x48] sm:$0xff]  ;;  %v104_v21 = vunpack.c.l.b16 %v66_v19  ;;  %v105_v22 = vunpack.c.h.b16 %v66_v19  ;;  %v430_v23 = vld [vmem:[#allocation5] sm:$0xff]  ;;  %v460_v29 = vld [vmem:[%s620_s2] ss:$0 sm:$0xff] }
  0x16   :  { %v438_v24 = vld [vmem:[#allocation5 + $0x40] sm:$0xff]  ;;  %v447_v27 = vld [vmem:[#allocation7 + $0x8] sm:$0xff]  ;;  %v461_v38 = vld [vmem:[%s622_s4] ss:$0 sm:$0xff] }
  0x17   :  { %208 = vmatpush.bf16.msra.mxu0 %v435_v5  ;;  %v106_v25 = vpack.c.b16 %v104_v21, %v104_v21  ;;  %v107_v26 = vpack.c.b16 %v105_v22, %v105_v22  ;;  %v446_v28 = vld [vmem:[#allocation7] sm:$0xff] }
  0x18   :  { %221 = vmatpush.bf16.msra.mxu1 %v443_v6 }
  0x19   :  { %304 = vmatpush.bf16.msra.mxu2 %v451_v10 }
  0x1b   :  { %209 = vmatpush.bf16.msra.mxu0 %v434_v8 }
  0x1c   :  { %222 = vmatpush.bf16.msra.mxu1 %v442_v9 }
  0x1d   :  { %305 = vmatpush.bf16.msra.mxu2 %v450_v13 }
  0x1f   :  { %210 = vmatpush.bf16.msra.mxu0 %v433_v11 }
  0x20   :  { %223 = vmatpush.bf16.msra.mxu1 %v441_v12 }
  0x21   :  { %306 = vmatpush.bf16.msra.mxu2 %v449_v16 }
  0x23   :  { %211 = vmatpush.bf16.msra.mxu0 %v432_v14 }
  0x24   :  { %224 = vmatpush.bf16.msra.mxu1 %v440_v15 }
  0x25   :  { %307 = vmatpush.bf16.msra.mxu2 %v448_v20 }
  0x27   :  { %212 = vmatpush.bf16.msra.mxu0 %v431_v17 }
  0x28   :  { %225 = vmatpush.bf16.msra.mxu1 %v439_v18 }
  0x29   :  { %308 = vmatpush.bf16.msra.mxu2 %v447_v27 }
  0x2b   :  { %213 = vmatpush.bf16.msra.mxu0 %v430_v23 }
  0x2c   :  { %226 = vmatpush.bf16.msra.mxu1 %v438_v24 }
  0x2d   :  { %309 = vmatpush.bf16.msra.mxu2 %v446_v28 }
  0x2e   :  { %214 = vmatmul.bf16.vlgmr.msra.gmra.mxu0 %v106_v25 }
  0x2f   :  { %227 = vmatmul.bf16.vlgmr.msra.gmra.mxu1 %v107_v26 }
  0xab   :  { %v215_v30 = vpop.f32.mrf.mxu0 }
  0xac   :  { %v228_v31 = vpop.f32.mrf.mxu1  ;;  %v216_v32 = vadd.f32 %v460_v29, %v215_v30 }
  0xae   :  { %v229_v33 = vadd.f32 %v228_v31, %v216_v32 }
  0xb0   :  { %v232_v34 = vmax.f32 %v229_v33, 0.0 }
  0xb2   :  { %v233_v35 = vpack.c.bf16 %v232_v34, %v232_v34 }
  0xb3   :  { %v217_v36 = vpop.f32.mrf.mxu0 }
  0xb4   :  { %v230_v37 = vpop.f32.mrf.mxu1  ;;  %310 = vmatmul.bf16.vlgmr.msra.gmra.mxu2 %v233_v35 }
 0x137   :  { %v311_v39 = vpop.f32.mrf.mxu2 }
 0x138   :  { %v312_v40 = vadd.f32 %v461_v38, %v311_v39 }
 0x13a   :  { %315 = vst [vmem:[#allocation8] sm:$0xff] %v312_v40 }
 0x13b   :  { %326 = dma.vmem_to_hbm [thread:$0]  %s322_s12, 128, %s324_s15, [#allocation4]  }
 0x13f   :  { %v313_v41 = vpop.f32.mrf.mxu2 }
 0x140   :  { %562 = dma.done.wait [#allocation4], 128  }
 0x141   :  { %563 = vsyncadd [#allocation4], 4294967168 }
 0x142   :  { %331 = vsyncpa [#allocation3], 1 }
 0x143   :  { %332 = vsyncpa [#allocation6], 1 }
 0x144   :  { %333 = vsyncpa [#allocation4], 1 }

</bundles_post_ra>
